<compile_context>
chip_gen: v6e
topology: v6e:2x2x1
jax: 0.10.0
libtpu: 0.0.40
codegen_flags: <defaults>
</compile_context>

<pallas_src>
import functools

import jax
import jax.numpy as jnp
from jax.experimental import pallas as pl
from jax.experimental.pallas import tpu as pltpu

POS_NUM = 5                     # POSITIONAL_ENCODING_BASIS_NUM
N_NEURONS = 32
X_DIM = 1                       # dim of `x`
ALPHA_DIM = 1                   # dim of `alpha`
XCO_DIM = 2                     # dim of `x_co`
BASE_DIM = X_DIM + ALPHA_DIM + XCO_DIM                      # 4
PE_DIM = XCO_DIM * POS_NUM                                  # 10 (per sin / per cos)
IN_DIM = BASE_DIM + 2 * PE_DIM                              # 24
OUT_DIM = 1
SIN_OFF = BASE_DIM                                          # rows 4:14
COS_OFF = BASE_DIM + PE_DIM                                 # rows 14:24


def _mlp_kernel(feat_ref, w1_ref, w2_ref, wo_ref, o_ref, feat24_ref):
    """One batch tile (batch on lanes): PE + 3-layer MLP with SiLU.

    feat_ref   : [4, TB]   rows: x, alpha, xco0, xco1
    w1_ref     : [32, 24]  columns regrouped to [base | sin-group | cos-group]
    w2_ref     : [32, 32]
    wo_ref     : [32, 1]   output weights as a column
    o_ref      : [1, TB]
    feat24_ref : [24, TB]  VMEM scratch holding the fused layer-1 features
    """
    feat = feat_ref[...]                         # [4, TB]
    xco = feat[2:4, :]                           # [2, TB]

    # Base features at rows 0:4 of the fused block.
    feat24_ref[0:BASE_DIM, :] = feat

    # Positional encoding, frequencies 2^k (k=0..4, log-sampled, no pi).
    # Only k=0 uses the EUP; k>=1 come from the double-angle recurrence on
    # the VPU:  sin(2t) = 2*s*c,  cos(2t) = 2*c*c - 1.
    s = jnp.sin(xco)                             # [2, TB]
    c = jnp.cos(xco)                             # [2, TB]
    feat24_ref[SIN_OFF:SIN_OFF + XCO_DIM, :] = s
    feat24_ref[COS_OFF:COS_OFF + XCO_DIM, :] = c
    for k in range(1, POS_NUM):
        s, c = 2.0 * s * c, 2.0 * c * c - 1.0
        feat24_ref[SIN_OFF + 2 * k:SIN_OFF + 2 * k + XCO_DIM, :] = s
        feat24_ref[COS_OFF + 2 * k:COS_OFF + 2 * k + XCO_DIM, :] = c

    # Layer 1: single fused [32,24] @ [24,TB] MXU matmul + SiLU.
    h1 = jnp.dot(w1_ref[...], feat24_ref[...], preferred_element_type=jnp.float32)
    h1 = h1 * jax.lax.logistic(h1)               # SiLU, EUP-pure sigmoid

    # Layer 2 + SiLU.
    h2 = jnp.dot(w2_ref[...], h1, preferred_element_type=jnp.float32)
    h2 = h2 * jax.lax.logistic(h2)

    # Output layer (M=1): weighted sublane reduction on VPU/XLU instead of a
    # nearly-empty MXU matmul.  -> lane-dense [1, TB] store.
    out = jnp.sum(wo_ref[...] * h2, axis=0, keepdims=True)          # [1, TB]
    o_ref[...] = out.astype(o_ref.dtype)


@functools.partial(jax.jit, static_argnames=("block_b",))
def nn_cond_pos_moresimpler_fwd(x, alpha, x_co, w1, w2, w_out, *, block_b=8192):
    """x: [B,1], alpha: [B,1], x_co: [B,2]; weights in PyTorch layout [out, in]."""
    B = x.shape[0]

    # Lane-aligned batch tile.  Guarantee >= 2 grid steps whenever the batch
    # spans more than one 128-lane chunk so the v7x megacore has work to split.
    block_b = max(128, (block_b // 128) * 128)
    n128 = pl.cdiv(B, 128)
    if n128 >= 2:
        tb = min(block_b, ((n128 + 1) // 2) * 128)
    else:
        tb = 128
    padded = pl.cdiv(B, tb) * tb
    grid = (padded // tb,)

    # Fused [4, padded] batch-on-lanes input (rows: x, alpha, xco0, xco1);
    # the tail pad is a zero block in the same concatenate chain (safe:
    # sin(0)=0, sigmoid bounded; padded lanes are sliced off below).
    feats = jnp.concatenate(
        [jnp.asarray(x, jnp.float32).T,
         jnp.asarray(alpha, jnp.float32).T,
         jnp.asarray(x_co, jnp.float32).T],
        axis=0)                                                   # [4, B]
    if padded != B:
        feats = jnp.concatenate(
            [feats, jnp.zeros((BASE_DIM, padded - B), jnp.float32)], axis=1)

    # Regroup W1 columns to [base | sin-group | cos-group] so the kernel's
    # fused feature block multiplies a single un-split [32, 24] weight.
    # Original column layout (PyTorch [out, in]):
    #   0..3  : x, alpha, xco0, xco1
    #   4..23 : for k=0..4: sin(f_k)xco0, sin(f_k)xco1, cos(f_k)xco0, cos(f_k)xco1
    w1 = jnp.asarray(w1, jnp.float32)                             # [32, 24]
    w1_base = w1[:, :BASE_DIM]                                    # [32, 4]
    w1_pe = w1[:, BASE_DIM:].reshape(N_NEURONS, POS_NUM, 2, XCO_DIM)
    w1_sin = w1_pe[:, :, 0, :].reshape(N_NEURONS, PE_DIM)         # [32, 10]
    w1_cos = w1_pe[:, :, 1, :].reshape(N_NEURONS, PE_DIM)         # [32, 10]
    w1_fused = jnp.concatenate([w1_base, w1_sin, w1_cos], axis=1)  # [32, 24]
    w2 = jnp.asarray(w2, jnp.float32)                             # [32, 32]
    wo_col = jnp.asarray(w_out, jnp.float32).T                    # [32, 1]

    full = lambda r, c: pl.BlockSpec((r, c), lambda i: (0, 0))

    out = pl.pallas_call(
        _mlp_kernel,
        out_shape=jax.ShapeDtypeStruct((OUT_DIM, padded), jnp.float32),
        grid_spec=pltpu.PrefetchScalarGridSpec(
            num_scalar_prefetch=0,
            grid=grid,
            in_specs=[
                pl.BlockSpec((BASE_DIM, tb), lambda i: (0, i)),   # fused features
                full(N_NEURONS, IN_DIM),                          # W1 (regrouped)
                full(N_NEURONS, N_NEURONS),                       # W2
                full(N_NEURONS, OUT_DIM),                         # Wout column
            ],
            out_specs=pl.BlockSpec((OUT_DIM, tb), lambda i: (0, i)),
            scratch_shapes=[pltpu.VMEM((IN_DIM, tb), jnp.float32)],
        ),
        compiler_params=pltpu.CompilerParams(
            dimension_semantics=("parallel",),
            vmem_limit_bytes=32 * 1024 * 1024,
        ),
    )(feats, w1_fused, w2, wo_col)

    # [1, padded] -> [B, 1]
    return out[:, :B].reshape(B, OUT_DIM)


def _reference_fwd(x, alpha, x_co, w1, w2, w_out):
    """Pure-JAX reference mirroring the PyTorch forward (direct sin/cos)."""
    enc = [x_co]
    for k in range(POS_NUM):
        freq = 2.0 ** k
        enc.append(jnp.sin(x_co * freq))
        enc.append(jnp.cos(x_co * freq))
    pe = jnp.concatenate(enc, axis=-1)
    h = jnp.concatenate([x, alpha, pe], axis=1)
    h = jax.nn.silu(h @ w1.T)
    h = jax.nn.silu(h @ w2.T)
    return h @ w_out.T


if __name__ == "__main__":
    key = jax.random.PRNGKey(0)
    k_x, k_a, k_c, k_w1, k_w2, k_wo = jax.random.split(key, 6)

    B = 256  # small demo batch; exercises 2 lane-dense grid steps

    x = jax.random.normal(k_x, (B, X_DIM), jnp.float32)
    alpha = jax.random.normal(k_a, (B, ALPHA_DIM), jnp.float32)
    x_co = jax.random.uniform(k_c, (B, XCO_DIM), jnp.float32, minval=-1.0, maxval=1.0)

    # Deterministic parameter init (PyTorch-Linear-style uniform, no bias).
    def _init(k, out_f, in_f):
        bound = 1.0 / jnp.sqrt(jnp.float32(in_f))
        return jax.random.uniform(k, (out_f, in_f), jnp.float32, -bound, bound)

    w1 = _init(k_w1, N_NEURONS, IN_DIM)       # [32, 24]
    w2 = _init(k_w2, N_NEURONS, N_NEURONS)    # [32, 32]
    w_out = _init(k_wo, OUT_DIM, N_NEURONS)   # [1, 32]

    out = nn_cond_pos_moresimpler_fwd(x, alpha, x_co, w1, w2, w_out)
    out = jax.block_until_ready(out)

    ref = _reference_fwd(x, alpha, x_co, w1, w2, w_out)
    assert out.shape == (B, OUT_DIM)
    assert jnp.allclose(out, ref, rtol=1e-3, atol=1e-3), "mismatch vs. reference"

    print("KERNEL_OK")
</pallas_src>

<mosaic_0001>
module attributes {stable_mosaic.version = 11 : i64} {
  func.func @_mlp_kernel(%arg0: i32, %arg1: memref<4x128xf32, #tpu.memory_space<vmem>>, %arg2: memref<32x24xf32, #tpu.memory_space<vmem>>, %arg3: memref<32x32xf32, #tpu.memory_space<vmem>>, %arg4: memref<32x1xf32, #tpu.memory_space<vmem>>, %arg5: memref<1x128xf32, #tpu.memory_space<vmem>>, %arg6: memref<24x128xf32, #tpu.memory_space<vmem>>) attributes {dimension_semantics = [#tpu.dimension_semantics<parallel>], iteration_bounds = array<i64: 2>, scalar_prefetch = 0 : i64, scratch_operands = 1 : i64, tpu.core_type = #tpu.core_type<tc>, window_params = [{transform_indices = @transform_0, window_bounds = array<i64: 4, 128>}, {pipeline_mode = #tpu.pipeline_mode<synchronous>, transform_indices = @transform_1, window_bounds = array<i64: 32, 24>}, {pipeline_mode = #tpu.pipeline_mode<synchronous>, transform_indices = @transform_2, window_bounds = array<i64: 32, 32>}, {pipeline_mode = #tpu.pipeline_mode<synchronous>, transform_indices = @transform_3, window_bounds = array<i64: 32, 1>}, {transform_indices = @transform_4, window_bounds = array<i64: 1, 128>}]} {
    %c0 = arith.constant 0 : index
    %c0_0 = arith.constant 0 : index
    %0 = vector.load %arg1[%c0, %c0_0] : memref<4x128xf32, #tpu.memory_space<vmem>>, vector<4x128xf32>
    %1 = vector.extract_strided_slice %0 {offsets = [2, 0], sizes = [2, 128], strides = [1, 1]} : vector<4x128xf32> to vector<2x128xf32>
    %c0_1 = arith.constant 0 : index
    %c0_2 = arith.constant 0 : index
    %2 = vector.load %arg6[%c0_1, %c0_2] : memref<24x128xf32, #tpu.memory_space<vmem>>, vector<4x128xf32>
    tpu.vector_store %arg6[%c0_1, %c0_2], %0 {strides = array<i32>} : memref<24x128xf32, #tpu.memory_space<vmem>>, vector<4x128xf32>,
    %3 = math.sin %1 : vector<2x128xf32>
    %4 = math.cos %1 : vector<2x128xf32>
    %c4 = arith.constant 4 : index
    %c0_3 = arith.constant 0 : index
    %5 = vector.load %arg6[%c4, %c0_3] : memref<24x128xf32, #tpu.memory_space<vmem>>, vector<2x128xf32>
    tpu.vector_store %arg6[%c4, %c0_3], %3 {strides = array<i32>} : memref<24x128xf32, #tpu.memory_space<vmem>>, vector<2x128xf32>,
    %c14 = arith.constant 14 : index
    %c0_4 = arith.constant 0 : index
    %6 = vector.load %arg6[%c14, %c0_4] : memref<24x128xf32, #tpu.memory_space<vmem>>, vector<2x128xf32>
    tpu.vector_store %arg6[%c14, %c0_4], %4 {strides = array<i32>} : memref<24x128xf32, #tpu.memory_space<vmem>>, vector<2x128xf32>,
    %cst = arith.constant 2.000000e+00 : f32
    %7 = vector.broadcast %cst : f32 to vector<2x128xf32>
    %8 = arith.mulf %7, %3 : vector<2x128xf32>
    %9 = arith.mulf %8, %4 : vector<2x128xf32>
    %cst_5 = arith.constant 2.000000e+00 : f32
    %10 = vector.broadcast %cst_5 : f32 to vector<2x128xf32>
    %11 = arith.mulf %10, %4 : vector<2x128xf32>
    %12 = arith.mulf %11, %4 : vector<2x128xf32>
    %cst_6 = arith.constant 1.000000e+00 : f32
    %13 = vector.broadcast %cst_6 : f32 to vector<2x128xf32>
    %14 = arith.subf %12, %13 : vector<2x128xf32>
    %c6 = arith.constant 6 : index
    %c0_7 = arith.constant 0 : index
    %15 = vector.load %arg6[%c6, %c0_7] : memref<24x128xf32, #tpu.memory_space<vmem>>, vector<2x128xf32>
    tpu.vector_store %arg6[%c6, %c0_7], %9 {strides = array<i32>} : memref<24x128xf32, #tpu.memory_space<vmem>>, vector<2x128xf32>,
    %c16 = arith.constant 16 : index
    %c0_8 = arith.constant 0 : index
    %16 = vector.load %arg6[%c16, %c0_8] : memref<24x128xf32, #tpu.memory_space<vmem>>, vector<2x128xf32>
    tpu.vector_store %arg6[%c16, %c0_8], %14 {strides = array<i32>} : memref<24x128xf32, #tpu.memory_space<vmem>>, vector<2x128xf32>,
    %cst_9 = arith.constant 2.000000e+00 : f32
    %17 = vector.broadcast %cst_9 : f32 to vector<2x128xf32>
    %18 = arith.mulf %17, %9 : vector<2x128xf32>
    %19 = arith.mulf %18, %14 : vector<2x128xf32>
    %cst_10 = arith.constant 2.000000e+00 : f32
    %20 = vector.broadcast %cst_10 : f32 to vector<2x128xf32>
    %21 = arith.mulf %20, %14 : vector<2x128xf32>
    %22 = arith.mulf %21, %14 : vector<2x128xf32>
    %cst_11 = arith.constant 1.000000e+00 : f32
    %23 = vector.broadcast %cst_11 : f32 to vector<2x128xf32>
    %24 = arith.subf %22, %23 : vector<2x128xf32>
    %c8 = arith.constant 8 : index
    %c0_12 = arith.constant 0 : index
    %25 = vector.load %arg6[%c8, %c0_12] : memref<24x128xf32, #tpu.memory_space<vmem>>, vector<2x128xf32>
    tpu.vector_store %arg6[%c8, %c0_12], %19 {strides = array<i32>} : memref<24x128xf32, #tpu.memory_space<vmem>>, vector<2x128xf32>,
    %c18 = arith.constant 18 : index
    %c0_13 = arith.constant 0 : index
    %26 = vector.load %arg6[%c18, %c0_13] : memref<24x128xf32, #tpu.memory_space<vmem>>, vector<2x128xf32>
    tpu.vector_store %arg6[%c18, %c0_13], %24 {strides = array<i32>} : memref<24x128xf32, #tpu.memory_space<vmem>>, vector<2x128xf32>,
    %cst_14 = arith.constant 2.000000e+00 : f32
    %27 = vector.broadcast %cst_14 : f32 to vector<2x128xf32>
    %28 = arith.mulf %27, %19 : vector<2x128xf32>
    %29 = arith.mulf %28, %24 : vector<2x128xf32>
    %cst_15 = arith.constant 2.000000e+00 : f32
    %30 = vector.broadcast %cst_15 : f32 to vector<2x128xf32>
    %31 = arith.mulf %30, %24 : vector<2x128xf32>
    %32 = arith.mulf %31, %24 : vector<2x128xf32>
    %cst_16 = arith.constant 1.000000e+00 : f32
    %33 = vector.broadcast %cst_16 : f32 to vector<2x128xf32>
    %34 = arith.subf %32, %33 : vector<2x128xf32>
    %c10 = arith.constant 10 : index
    %c0_17 = arith.constant 0 : index
    %35 = vector.load %arg6[%c10, %c0_17] : memref<24x128xf32, #tpu.memory_space<vmem>>, vector<2x128xf32>
    tpu.vector_store %arg6[%c10, %c0_17], %29 {strides = array<i32>} : memref<24x128xf32, #tpu.memory_space<vmem>>, vector<2x128xf32>,
    %c20 = arith.constant 20 : index
    %c0_18 = arith.constant 0 : index
    %36 = vector.load %arg6[%c20, %c0_18] : memref<24x128xf32, #tpu.memory_space<vmem>>, vector<2x128xf32>
    tpu.vector_store %arg6[%c20, %c0_18], %34 {strides = array<i32>} : memref<24x128xf32, #tpu.memory_space<vmem>>, vector<2x128xf32>,
    %cst_19 = arith.constant 2.000000e+00 : f32
    %37 = vector.broadcast %cst_19 : f32 to vector<2x128xf32>
    %38 = arith.mulf %37, %29 : vector<2x128xf32>
    %39 = arith.mulf %38, %34 : vector<2x128xf32>
    %cst_20 = arith.constant 2.000000e+00 : f32
    %40 = vector.broadcast %cst_20 : f32 to vector<2x128xf32>
    %41 = arith.mulf %40, %34 : vector<2x128xf32>
    %42 = arith.mulf %41, %34 : vector<2x128xf32>
    %cst_21 = arith.constant 1.000000e+00 : f32
    %43 = vector.broadcast %cst_21 : f32 to vector<2x128xf32>
    %44 = arith.subf %42, %43 : vector<2x128xf32>
    %c12 = arith.constant 12 : index
    %c0_22 = arith.constant 0 : index
    %45 = vector.load %arg6[%c12, %c0_22] : memref<24x128xf32, #tpu.memory_space<vmem>>, vector<2x128xf32>
    tpu.vector_store %arg6[%c12, %c0_22], %39 {strides = array<i32>} : memref<24x128xf32, #tpu.memory_space<vmem>>, vector<2x128xf32>,
    %c22 = arith.constant 22 : index
    %c0_23 = arith.constant 0 : index
    %46 = vector.load %arg6[%c22, %c0_23] : memref<24x128xf32, #tpu.memory_space<vmem>>, vector<2x128xf32>
    tpu.vector_store %arg6[%c22, %c0_23], %44 {strides = array<i32>} : memref<24x128xf32, #tpu.memory_space<vmem>>, vector<2x128xf32>,
    %c0_24 = arith.constant 0 : index
    %c0_25 = arith.constant 0 : index
    %47 = vector.load %arg2[%c0_24, %c0_25] : memref<32x24xf32, #tpu.memory_space<vmem>>, vector<32x24xf32>
    %c0_26 = arith.constant 0 : index
    %c0_27 = arith.constant 0 : index
    %48 = vector.load %arg6[%c0_26, %c0_27] : memref<24x128xf32, #tpu.memory_space<vmem>>, vector<24x128xf32>
    %cst_28 = arith.constant dense<0.000000e+00> : vector<32x128xf32>
    %49 = tpu.matmul %47, %48, %cst_28 {dimension_numbers = #tpu.dot_dimension_numbers<[1], [0], [0], [1], [0, 0, 1, 1], [], []>} : vector<32x24xf32>, vector<24x128xf32>, vector<32x128xf32> -> vector<32x128xf32>
    %50 = arith.negf %49 : vector<32x128xf32>
    %51 = math.exp %50 : vector<32x128xf32>
    %cst_29 = arith.constant 1.000000e+00 : f32
    %52 = vector.broadcast %cst_29 : f32 to vector<32x128xf32>
    %53 = arith.addf %52, %51 : vector<32x128xf32>
    %54 = arith.divf %52, %53 : vector<32x128xf32>
    %55 = arith.mulf %49, %54 : vector<32x128xf32>
    %c0_30 = arith.constant 0 : index
    %c0_31 = arith.constant 0 : index
    %56 = vector.load %arg3[%c0_30, %c0_31] : memref<32x32xf32, #tpu.memory_space<vmem>>, vector<32x32xf32>
    %cst_32 = arith.constant dense<0.000000e+00> : vector<32x128xf32>
    %57 = tpu.matmul %56, %55, %cst_32 {dimension_numbers = #tpu.dot_dimension_numbers<[1], [0], [0], [1], [0, 0, 1, 1], [], []>} : vector<32x32xf32>, vector<32x128xf32>, vector<32x128xf32> -> vector<32x128xf32>
    %58 = arith.negf %57 : vector<32x128xf32>
    %59 = math.exp %58 : vector<32x128xf32>
    %cst_33 = arith.constant 1.000000e+00 : f32
    %60 = vector.broadcast %cst_33 : f32 to vector<32x128xf32>
    %61 = arith.addf %60, %59 : vector<32x128xf32>
    %62 = arith.divf %60, %61 : vector<32x128xf32>
    %63 = arith.mulf %57, %62 : vector<32x128xf32>
    %c0_34 = arith.constant 0 : index
    %c0_35 = arith.constant 0 : index
    %64 = vector.load %arg4[%c0_34, %c0_35] : memref<32x1xf32, #tpu.memory_space<vmem>>, vector<32x1xf32>
    %65 = vector.broadcast %64 : vector<32x1xf32> to vector<32x128xf32>
    %66 = arith.mulf %65, %63 : vector<32x128xf32>
    %cst_36 = arith.constant dense<0.000000e+00> : vector<128xf32>
    %67 = vector.multi_reduction <add>, %66, %cst_36 [0] : vector<32x128xf32> to vector<128xf32>
    %68 = vector.shape_cast %67 : vector<128xf32> to vector<1x128xf32>
    %c0_37 = arith.constant 0 : index
    %c0_38 = arith.constant 0 : index
    %69 = vector.load %arg5[%c0_37, %c0_38] : memref<1x128xf32, #tpu.memory_space<vmem>>, vector<1x128xf32>
    tpu.vector_store %arg5[%c0_37, %c0_38], %68 {strides = array<i32>} : memref<1x128xf32, #tpu.memory_space<vmem>>, vector<1x128xf32>,
    return
  }
  func.func @transform_0(%arg0: i32) -> (i32, i32) {
    %c0_i32 = arith.constant 0 : i32
    %c0_i32_0 = arith.constant 0 : i32
    return %c0_i32, %arg0 : i32, i32
  }
  func.func @transform_1(%arg0: i32) -> (i32, i32) {
    %c0_i32 = arith.constant 0 : i32
    %c0_i32_0 = arith.constant 0 : i32
    %c0_i32_1 = arith.constant 0 : i32
    return %c0_i32, %c0_i32_0 : i32, i32
  }
  func.func @transform_2(%arg0: i32) -> (i32, i32) {
    %c0_i32 = arith.constant 0 : i32
    %c0_i32_0 = arith.constant 0 : i32
    %c0_i32_1 = arith.constant 0 : i32
    return %c0_i32, %c0_i32_0 : i32, i32
  }
  func.func @transform_3(%arg0: i32) -> (i32, i32) {
    %c0_i32 = arith.constant 0 : i32
    %c0_i32_0 = arith.constant 0 : i32
    %c0_i32_1 = arith.constant 0 : i32
    return %c0_i32, %c0_i32_0 : i32, i32
  }
  func.func @transform_4(%arg0: i32) -> (i32, i32) {
    %c0_i32 = arith.constant 0 : i32
    %c0_i32_0 = arith.constant 0 : i32
    return %c0_i32, %arg0 : i32, i32
  }
}

</mosaic_0001>

<bundles_post_ra>
// kernel: squeeze.2
= control target key start
LH: loop header
LB: loop body
LE: loop exit
PB: predicated region body
PF: predicated region fallthrough
CT: control target
= control target key end

     0   :  { %vm27_vm0 = vcmask 261120   ;;  %s100_s0 = inlined_call_operand.vmem [shape: f32[32,5,1,2], index: 0, kind: input, shape index: {}]   ;;  %s101_s1 = inlined_call_operand.vmem [shape: f32[32,10], index: 1, kind: output, shape index: {}]  }
   0x1   :  { %v52_v0 = vld [vmem:[%s100_s0 + $0x8] sm:$0x3]  ;;  %v53_v1 = vld [vmem:[%s100_s0 + $0x6] sm:$0x3]  ;;  %v54_v2 = vld [vmem:[%s100_s0 + $0x4] sm:$0x3] }
   0x2   :  { %9 = vst [vmem:[#allocation0 + $0x18] sm:$0x3] %v52_v0  ;;  %14 = vst [vmem:[#allocation0 + $0x20] sm:$0x3] %v53_v1  ;;  %v55_v3 = vld [vmem:[%s100_s0 + $0x2] sm:$0x3] }
   0x3   :  { %19 = vst [vmem:[#allocation0] sm:$0x3] %v54_v2  ;;  %v24_v4 = vld [vmem:[%s100_s0] sm:$0x3]  ;;  %23 = vst [vmem:[#allocation0 + $0x10] sm:$0x3] %v55_v3 }
   0x4   :  { %25 = vst [vmem:[#allocation0 + $0x8] sm:$0x3] %v24_v4 }
   0x9   :  { %v40_v6 = vld [vmem:[#allocation0 + $0x20] sm:$0x3]   ;;  %v45_v7 = vld [vmem:[#allocation0 + $0x18] sm:$0x3]  }
   0xa   :  { %v35_v5 = vld [vmem:[#allocation0] sm:$0x3]   ;;  %v30_v9 = vld [vmem:[#allocation0 + $0x10] sm:$0x3]   ;;  %58 = vst.msk [vmem:[%s101_s1 + $0x6] sm:$0x3] %vm27_vm0, %v40_v6  }
   0xb   :  { %v26_v8 = vld [vmem:[#allocation0 + $0x8] sm:$0x3]   ;;  %57 = vst.msk [vmem:[%s101_s1 + $0x4] sm:$0x3] %vm27_vm0, %v35_v5   ;;  %59 = vst.msk [vmem:[%s101_s1 + $0x8] sm:$0x3] %vm27_vm0, %v45_v7  }
   0xc   :  { %28 = vst.msk [vmem:[%s101_s1] sm:$0x3] %vm27_vm0, %v26_v8   ;;  %56 = vst.msk [vmem:[%s101_s1 + $0x2] sm:$0x3] %vm27_vm0, %v30_v9  }

// kernel: nn_cond_pos_moresimpler_fwd.1
= control target key start
LH: loop header
LB: loop body
LE: loop exit
PB: predicated region body
PF: predicated region fallthrough
CT: control target
= control target key end

     0   :  { %9 = vsyncpa [#allocation4], 0  ;;  %s1213_s0 = inlined_call_operand.vmem [shape: f32[4,256], index: 0, kind: input, shape index: {}]   ;;  %s1214_s1 = inlined_call_operand.vmem [shape: f32[32,24], index: 1, kind: input, shape index: {}]   ;;  %s1215_s2 = inlined_call_operand.vmem [shape: f32[32,32], index: 2, kind: input, shape index: {}]   ;;  %s1216_s3 = inlined_call_operand.vmem [shape: f32[32,1], index: 3, kind: input, shape index: {}]   ;;  %s1217_s4 = inlined_call_operand.hbm [shape: f32[1,256], index: 4, kind: output, shape index: {}]  }
   0x1   :  { %11 = vsyncpa [#allocation4 + $0x1], 0  ;;  %s1060_s15 = smov 0   ;;  %s1062_s16 = smov 0  }
   0x2   :  { %s1064_s17 = smov 0   ;;  %s1066_s18 = smov 0  }
   0x3 LB: > { %s1081_s19 = sadd.s32 4294967295, %s1025_s18   ;;  %s800_s20 = sadd.s32 4294967294, %s1025_s18   ;;  %s1025_s18 = sphi %s1066_s18, %s1223_s18   ;;  %s1021_s17 = sphi %s1064_s17, %s1222_s17   ;;  %s1017_s16 = sphi %s1062_s16, %s1221_s16   ;;  %s1013_s15 = sphi %s1060_s15, %s1220_s15  }
   0x4   : > { %s1085_s21 = sadd.s32 1, %s1025_s18   ;;  %s113_s22 = sadd.s32 1, %s1021_s17 }
   0x5   : > { %s110_s23 = ssub.s32 %s1025_s18, %s1085_s21  ;;  %p123_p0 = scmp.ne.s32.totalorder %s1021_s17, %s1017_s16 }
   0x6   : > { %p111_p1 = scmp.eq.s32.totalorder %s110_s23, 0  ;;  %p124_p2 = scmp.eq.s32.totalorder %s1081_s19, 1 }
   0x7   : > { %p129_p3 = scmp.ne.s32.totalorder %s1017_s16, %s1013_s15  ;;  %p130_p4 = scmp.eq.s32.totalorder %s800_s20, 1 }
   0x8   : > { %s1096_s24 = scalar_select %p111_p1, %s1021_s17, %s113_s22  }
   0x9   : > { %p1098_p5 = por %p124_p2, %p123_p0  ;;  %p1102_p6 = por %p130_p4, %p129_p3 }
   0xa   : > { %p803_p7 = scmp.ge.s32.totalorder %s1025_s18, 1  ;;  %p164_p8 = scmp.lt.s32.totalorder %s1025_s18, 3 }
   0xc   : > { %p165_p9 = pnand %p803_p7, %p164_p8 }
   0xd   : > { %p188_p10 = scmp.lt.s32.totalorder (!%p165_p9), %s1081_s19, 1  ;;  %s186_s13 = sand.u32 (!%p165_p9), 1, %s1017_s16  }
   0xe   : > { %168 = sbr.rel (%p165_p9) target bundleno = 648 (0x288), region = 36  ;;  %s833_s14 = sshll.u32 (!%p165_p9), %s1081_s19, 4 }
   0xf   : > { %s187_s20 = scalar_lea.vmem (!%p165_p9), [#allocation3], %s186_s13  ;;  %s743_s28 = scalar_lea.hbm (!%p165_p9), %s1217_s4, %s833_s14 }
  0x10   : > { %s745_s22 = sshll.u32 (!%p165_p9), %s187_s20, 4  ;;  %s1034_s5 = smov (!%p165_p9), [#allocation3]   ;;  %s746_s22 = int_to_ptr.vmem [resolvable:$true] %s745_s22 }
  0x11   : > { %s969_s6 = sshll.u32 (!%p165_p9), %s1034_s5, 4  ;;  %s970_s6 = int_to_ptr.vmem [resolvable:$false] %s969_s6 }
  0x12   : > { %p972_p0 = scmp.lt.s32.totalorder (!%p165_p9), %s746_s22, %s970_s6 }
  0x13   : > { %v431_v0 = vld [vmem:[%s1214_s1] sm:$0xff]  ;;  %s189_s29 = scalar_select %p188_p10, %s1081_s19, 1  ;;  %vm438_vm0 = vcmask 195584   ;;  %v1027_v13 = vmov 683565275  }
  0x14   : > { %857 = vmatprep.mubr.msk.f32.mxu0 %vm438_vm0, %v431_v0  ;;  %v1028_v15 = vmov 2475754826   ;;  %v1029_v17 = vmov 2131351028   ;;  %v1030_v19 = vmov 2102212464  }
  0x15   : > { %s804_s30 = sshll.u32 %s189_s29, 2  ;;  %v1031_v21 = vmov 920167782   ;;  %v1032_v28 = vmov 1326507024   ;;  %s733_s29 = scalar_lea.sflag [#allocation4], %s186_s13 }
  0x16   : > { %s191_s7 = scalar_lea.vmem %s1213_s0, %s804_s30  ;;  %s965_s30 = scalar_lea.vmem %s746_s22, 16 }
  0x17   : > { %v1117_v1 = vld [vmem:[%s191_s7] sm:$0xf]  ;;  %p966_p11 = scmp.ne.s32.totalorder %s746_s22, %s965_s30  ;;  %s971_s19 = scalar_lea.vmem %s970_s6, 32 }
  0x18   : > { %v197_v2 = vand.u32 2139095040, %v1117_v1  ;;  %193 = vst [vmem:[#allocation2] sm:$0xf] %v1117_v1  ;;  %v194_v4 = vand.u32 2147483647, %v1117_v1  ;;  %vm196_vm8 = vcmp.lt.s32.totalorder %v1117_v1, 0  ;;  %p973_p1 = scmp.lt.s32.totalorder %s971_s19, %s965_s30 }
  0x19   : > { %p967_p12 = pnand %p966_p11, %p1098_p5 }
  0x1a   : > { %v198_v3 = vshrl.u32 %v197_v2, 23  ;;  %v201_v7 = vand.u32 8388607, %v194_v4  ;;  %vm195_vm9 = vcmp.le.f32.partialorder %v194_v4, 0.7853982  ;;  %p974_p2 = por %p973_p1, %p972_p0 }
  0x1b   : > { %p968_p13 = pneg %p967_p12 }
  0x1c   : > { %v805_v5 = vadd.s32 4294967169, %v198_v3  ;;  %v202_v10 = vor.u32 8388608, %v201_v7 }
  0x1d   : > { %p975_p3 = pnand %p974_p2, %p968_p13 }
  0x1e   : > { %v204_v6 = vadd.s32 1, %v805_v5  ;;  %v242_v30 = vshll.u32 %v202_v10, 8 }
  0x20   : > { %vm205_vm1 = vcmp.gt.s32.totalorder %v204_v6, 0 }
  0x21   : > { %v206_v8 = vsel %vm205_vm1, %v204_v6, 0  ;;  %vm286_vm1 = vweird.f32 %v1117_v1 }
  0x22   : > { %v208_v9 = vand.u32 31, %v206_v8  ;;  %v207_v11 = vshrl.u32 %v206_v8, 5 }
  0x24   : > { %v209_v12 = vsub.s32 32, %v208_v9  ;;  %v211_v14 = vshll.u32 %v1027_v13, %v208_v9  ;;  %v214_v16 = vshll.u32 %v1028_v15, %v208_v9  ;;  %v217_v18 = vshll.u32 %v1029_v17, %v208_v9 }
  0x25   : > { %v220_v20 = vshll.u32 %v1030_v19, %v208_v9  ;;  %v223_v22 = vshll.u32 %v1031_v21, %v208_v9  ;;  %vm226_vm2 = vcmp.lt.s32.totalorder %v207_v11, 1  ;;  %vm229_vm3 = vcmp.lt.s32.totalorder %v207_v11, 4 }
  0x26   : > { %v210_v23 = vshrl.u32 %v1027_v13, %v209_v12  ;;  %v212_v24 = vshrl.u32 %v1028_v15, %v209_v12  ;;  %v215_v25 = vshrl.u32 %v1029_v17, %v209_v12  ;;  %v218_v26 = vshrl.u32 %v1030_v19, %v209_v12 }
  0x27   : > { %v221_v27 = vshrl.u32 %v1031_v21, %v209_v12  ;;  %v224_v29 = vshrl.u32 %v1032_v28, %v209_v12  ;;  %vm227_vm4 = vcmp.lt.s32.totalorder %v207_v11, 2  ;;  %vm228_vm5 = vcmp.lt.s32.totalorder %v207_v11, 3 }
  0x28   : > { %v213_v31 = vor.u32 %v212_v24, %v211_v14  ;;  %v216_v32 = vor.u32 %v215_v25, %v214_v16  ;;  %v219_v33 = vor.u32 %v218_v26, %v217_v18 }
  0x29   : > { %v222_v34 = vor.u32 %v221_v27, %v220_v20  ;;  %v225_v35 = vor.u32 %v224_v29, %v223_v22 }
  0x2a   : > { %v230_v36 = vsel %vm226_vm2, %v210_v23, %v213_v31  ;;  %v231_v37 = vsel %vm229_vm3, %v219_v33, 2102212464  ;;  %v234_v38 = vsel %vm226_vm2, %v213_v31, %v216_v32  ;;  %v238_v39 = vsel %vm226_vm2, %v216_v32, %v219_v33 }
  0x2b   : > { %v232_v40 = vsel %vm228_vm5, %v216_v32, %v231_v37  ;;  %v235_v41 = vsel %vm229_vm3, %v222_v34, 920167782  ;;  %v239_v42 = vsel %vm229_vm3, %v225_v35, 1326507024  ;;  %vm568_vm2 = vcmask 261120  }
  0x2c   : > { %v236_v43 = vsel %vm228_vm5, %v219_v33, %v235_v41  ;;  %v240_v44 = vsel %vm228_vm5, %v222_v34, %v239_v42  ;;  %v233_v45 = vsel %vm227_vm4, %v230_v36, %v232_v40 }
  0x2d   : > { %v237_v46 = vsel %vm227_vm4, %v234_v38, %v236_v43  ;;  %v241_v47 = vsel %vm227_vm4, %v238_v39, %v240_v44  ;;  %v249_v52 = vmul.u32 %v242_v30, %v233_v45 }
  0x2e   : > { %v1124_v48 = vmul.u32.u64.low %v242_v30, %v241_v47  ;;  %v1125_v49 = vmul.u32.u64.high %v242_v30, %v241_v47, %v1124_v48  ;;  %v1127_v50 = vmul.u32.u64.low %v242_v30, %v237_v46  ;;  %v1128_v51 = vmul.u32.u64.high %v242_v30, %v237_v46, %v1127_v50 }
  0x30   : > { %vm251_vm6 = vc.u32 %v1125_v49, %v1127_v50  ;;  %v252_v53 = vadd.s32 1, %v1128_v51  ;;  %v250_v0 = vadd.s32 %v1127_v50, %v1125_v49 }
  0x32   : > { %v253_v54 = vsel %vm251_vm6, %v252_v53, %v1128_v51 }
  0x33   : > { %v254_v55 = vadd.s32 %v253_v54, %v249_v52 }
  0x35   : > { %v255_v56 = vadd.s32 536870912, %v254_v55 }
  0x37   : > { %v256_v57 = vshrl.u32 %v255_v56, 30 }
  0x39   : > { %v257_v58 = vshll.u32 %v256_v57, 30  ;;  %v280_v16 = vsub.s32 4, %v256_v57 }
  0x3b   : > { %v258_v59 = vsub.s32 %v254_v55, %v257_v58  ;;  %v281_v19 = vsel %vm196_vm8, %v280_v16, %v256_v57  ;;  %v432_v57 = vld [vmem:[%s1214_s1 + $0x8] sm:$0xff]  ;;  %v433_v58 = vld [vmem:[%s1214_s1 + $0x10] sm:$0xff] }
  0x3c   : > { %v283_v20 = vsel %vm195_vm9, 0, %v281_v19 }
  0x3d   : > { %v260_v60 = vsub.s32 0, %v258_v59  ;;  %v287_v21 = vadd.s32 3, %v283_v20  ;;  %v391_v22 = vand.u32 3, %v283_v20 }
  0x3f   : > { %v806_v61 = vmin.u32 %v260_v60, %v258_v59  ;;  %v288_v23 = vand.u32 3, %v287_v21  ;;  %vm396_vm10 = vcmp.eq.s32.totalorder %v391_v22, 2  ;;  %vm393_vm12 = vcmp.eq.s32.totalorder %v391_v22, 0  ;;  %v564_v60 = vld [vmem:[%s1215_s2] sm:$0xff] }
  0x40   : > { %vm392_vm14 = vcmp.lt.s32.totalorder %v391_v22, 2  ;;  %871 = vmatprep.mubr.msk.f32.mxu1 %vm568_vm2, %v564_v60 }
  0x41   : > { %v262_v62 = vclz %v806_v61  ;;  %vm293_vm11 = vcmp.eq.s32.totalorder %v288_v23, 2  ;;  %vm290_vm13 = vcmp.eq.s32.totalorder %v288_v23, 0  ;;  %vm289_vm15 = vcmp.lt.s32.totalorder %v288_v23, 2  ;;  %v694_v61 = vld [vmem:[%s1216_s3] sm:$0xff] }
  0x43   : > { %v807_v63 = vadd.s32 4294967294, %v262_v62  ;;  %v696_v62 = vld [vmem:[%s1216_s3 + $0x10] sm:$0xff] }
  0x45   : > { %vm808_vm7 = vcmp.lt.s32.totalorder %v807_v63, 0 }
  0x46   : > { %v265_v2 = vsel %vm808_vm7, 0, %v807_v63  ;;  %v1033_v63 = vmov 0  }
  0x47   : > { %v266_v3 = vsub.s32 32, %v265_v2  ;;  %v267_v5 = vshll.u32 %v258_v59, %v265_v2  ;;  %v270_v6 = vsub.s32 4294967266, %v265_v2  ;;  %v434_v59 = vld [vmem:[%s1214_s1 + $0x18] sm:$0xff]  ;;  %927 = vset.pattern.permute.xlu0 %v1033_v63  ;;  %928 = vset.pattern.permute.xlu1 %v1033_v63 }
  0x48   : > { %700 = vperm.xlu0 %927, %v694_v61   ;;  %710 = vperm.xlu1 %928, %v696_v62   ;;  %v697_v2 = vld [vmem:[%s1216_s3 + $0x18] sm:$0xff] }
  0x49   : > { %v268_v7 = vshrl.u32 %v250_v0, %v266_v3  ;;  %v271_v8 = vadd.s32 127, %v270_v6  ;;  %v695_v0 = vld [vmem:[%s1216_s3 + $0x8] sm:$0xff] }
  0x4b   : > { %v269_v9 = vor.u32 %v268_v7, %v267_v5  ;;  %v272_v10 = vshll.u32 %v271_v8, 23 }
  0x4c   : > { %705 = vperm.xlu0 %927, %v695_v0   ;;  %715 = vperm.xlu1 %928, %v697_v2  }
  0x4d   : > { %v273_v11 = vor.u32 4788187, %v272_v10  ;;  %v276_v12 = vcvt.s32.f32 %v269_v9 }
  0x4f   : > { %v274_v13 = vand.u32 2147483647, %v273_v11 }
  0x51   : > { %v277_v14 = vmul.f32 %v276_v12, %v274_v13 }
  0x53   : > { %v278_v15 = vxor.u32 2147483648, %v277_v14 }
  0x55   : > { %v279_v17 = vsel %vm196_vm8, %v278_v15, %v277_v14 }
  0x56   : > { %v282_v18 = vsel %vm195_vm9, %v1117_v1, %v279_v17 }
  0x57   : > { %929 = vcosq.f32 %v282_v18 }
  0x58   : > { %931 = vsinq.f32 %v282_v18 }
  0x64   : > { %v930_v24 = vpop.eup %929 }
  0x65   : > { %v932_v25 = vpop.eup %931  ;;  %v294_v26 = vxor.u32 2147483648, %v930_v24 }
  0x66   : > { %v291_v4 = vxor.u32 2147483648, %v932_v25 }
  0x67   : > { %v398_v27 = vsel %vm396_vm10, %v294_v26, %v932_v25  ;;  %v295_v28 = vsel %vm293_vm11, %v294_v26, %v932_v25 }
  0x68   : > { %v395_v29 = vsel %vm393_vm12, %v930_v24, %v291_v4  ;;  %v292_v30 = vsel %vm290_vm13, %v930_v24, %v291_v4 }
  0x69   : > { %v399_v31 = vsel %vm392_vm14, %v395_v29, %v398_v27  ;;  %v296_v32 = vsel %vm289_vm15, %v292_v30, %v295_v28  ;;  %v565_v27 = vld [vmem:[%s1215_s2 + $0x8] sm:$0xff]  ;;  %v566_v28 = vld [vmem:[%s1215_s2 + $0x10] sm:$0xff]  ;;  %v567_v29 = vld [vmem:[%s1215_s2 + $0x18] sm:$0xff] }
  0x6a   : > { %v400_v33 = vsel %vm286_vm1, nan, %v399_v31  ;;  %v297_v34 = vsel %vm286_vm1, nan, %v296_v32 }
  0x6b   : > { %v405_v35 = vmul.f32 2.0, %v400_v33  ;;  %402 = vst [vmem:[#allocation2 + $0xc] sm:$0xc] %v400_v33  ;;  %v403_v36 = vmul.f32 2.0, %v297_v34  ;;  %401 = vst [vmem:[#allocation2 + $0x2] sm:$0xc] %v297_v34 }
  0x6d   : > { %v406_v37 = vmul.f32 %v405_v35, %v400_v33  ;;  %v404_v38 = vmul.f32 %v403_v36, %v400_v33 }
  0x6f   : > { %v813_v39 = vadd.f32 -1.0, %v406_v37  ;;  %v410_v40 = vmul.f32 2.0, %v404_v38  ;;  %408 = vst [vmem:[#allocation2 + $0x4] sm:$0xc] %v404_v38 }
  0x71   : > { %409 = vst [vmem:[#allocation2 + $0xe] sm:$0xc] %v813_v39  ;;  %v412_v41 = vmul.f32 2.0, %v813_v39  ;;  %v411_v1 = vmul.f32 %v813_v39, %v410_v40 }
  0x73   : > { %v413_v42 = vmul.f32 %v813_v39, %v412_v41  ;;  %415 = vst [vmem:[#allocation2 + $0x6] sm:$0xc] %v411_v1  ;;  %v417_v43 = vmul.f32 2.0, %v411_v1 }
  0x75   : > { %v814_v44 = vadd.f32 -1.0, %v413_v42 }
  0x76   : > { %v435_v56 = vld [vmem:[#allocation2] sm:$0xff] }
  0x77   : > { %416 = vst [vmem:[#allocation2 + $0x10] sm:$0xc] %v814_v44  ;;  %v419_v45 = vmul.f32 2.0, %v814_v44  ;;  %v418_v46 = vmul.f32 %v814_v44, %v417_v43 }
  0x79   : > { %v420_v47 = vmul.f32 %v814_v44, %v419_v45  ;;  %422 = vst [vmem:[#allocation2 + $0x8] sm:$0xc] %v418_v46  ;;  %v424_v48 = vmul.f32 2.0, %v418_v46 }
  0x7b   : > { %v815_v49 = vadd.f32 -1.0, %v420_v47 }
  0x7d   : > { %423 = vst [vmem:[#allocation2 + $0x12] sm:$0xc] %v815_v49  ;;  %v426_v50 = vmul.f32 2.0, %v815_v49  ;;  %v425_v51 = vmul.f32 %v815_v49, %v424_v48 }
  0x7f   : > { %v427_v52 = vmul.f32 %v815_v49, %v426_v50  ;;  %429 = vst [vmem:[#allocation2 + $0xa] sm:$0xc] %v425_v51 }
  0x81   : > { %v816_v53 = vadd.f32 -1.0, %v427_v52 }
  0x83   : > { %430 = vst [vmem:[#allocation2 + $0x14] sm:$0xc] %v816_v53 }
  0x86   : > { %v436_v55 = vld [vmem:[#allocation2 + $0x8] sm:$0xff] }
  0x8a   : > { %v437_v54 = vld [vmem:[#allocation2 + $0x10] sm:$0xff] }
  0x8b   : > { %851 = vmatprep.subr.mxu0 %v437_v54 }
  0x8c   : > { %852 = vmatpush3.msra.mxu0 %v437_v54 }
  0x8d   : > { %853 = vmatprep.subr.mxu0 %v436_v55 }
  0x8e   : > { %854 = vmatpush3.msra.mxu0 %v436_v55 }
  0x8f   : > { %855 = vmatprep.subr.mxu0 %v435_v56 }
  0x90   : > { %856 = vmatpush3.msra.mxu0 %v435_v56 }
  0x91   : > { %858 = vmatmul.mubr.msk.f32.vlgmr.msra.gmra.mxu0 %vm438_vm0, %v432_v57 }
  0x92   : > { %860 = vmatprep.mubr.msk.f32.mxu0 %vm438_vm0, %v433_v58 }
  0x95   : > { %861 = vmatmul.mubr.msk.f32.gmra.mxu0 %vm438_vm0, %v434_v59 }
  0xc3   : > { %v701_v45 = vpop.permute.xlu0 %700  ;;  %v711_v48 = vpop.permute.xlu1 %710 }
  0xc7   : > { %v706_v52 = vpop.permute.xlu0 %705  ;;  %v716_v58 = vpop.permute.xlu1 %715 }
 0x151   : > { %v859_v3 = vpop.f32.mrf.mxu0 }
 0x152   : > { %v822_v5 = vmul.f32 -1.442695, %v859_v3 }
 0x153   : > { %v517_v6 = vpop.f32.mrf.mxu0 }
 0x154   : > { %v821_v7 = vmul.f32 -1.442695, %v517_v6  ;;  %933 = vpow2.f32 %v822_v5 }
 0x155   : > { %v862_v8 = vpop.f32.mrf.mxu0 }
 0x156   : > { %v824_v9 = vmul.f32 -1.442695, %v862_v8  ;;  %935 = vpow2.f32 %v821_v7 }
 0x157   : > { %v527_v10 = vpop.f32.mrf.mxu0 }
 0x158   : > { %937 = vpow2.f32 %v824_v9  ;;  %v823_v11 = vmul.f32 -1.442695, %v527_v10 }
 0x15a   : > { %939 = vpow2.f32 %v823_v11 }
 0x161   : > { %v934_v12 = vpop.eup %933 }
 0x162   : > { %v549_v15 = vadd.f32 1.0, %v934_v12 }
 0x163   : > { %v936_v13 = vpop.eup %935 }
 0x164   : > { %v548_v18 = vadd.f32 1.0, %v936_v13 }
 0x165   : > { %v938_v14 = vpop.eup %937 }
 0x166   : > { %v551_v16 = vadd.f32 1.0, %v938_v14 }
 0x167   : > { %v940_v17 = vpop.eup %939 }
 0x168   : > { %941 = vrcp.f32 %v551_v16  ;;  %v550_v19 = vadd.f32 1.0, %v940_v17 }
 0x169   : > { %943 = vrcp.f32 %v549_v15 }
 0x16a   : > { %945 = vrcp.f32 %v550_v19 }
 0x16b   : > { %947 = vrcp.f32 %v548_v18 }
 0x175   : > { %v942_v20 = vpop.eup %941 }
 0x176   : > { %v944_v21 = vpop.eup %943  ;;  %v563_v22 = vmul.f32 %v942_v20, %v862_v8 }
 0x177   : > { %v946_v23 = vpop.eup %945  ;;  %v561_v26 = vmul.f32 %v944_v21, %v859_v3 }
 0x178   : > { %v562_v24 = vmul.f32 %v946_v23, %v527_v10  ;;  %863 = vmatprep.subr.mxu1 %v563_v22  ;;  %v948_v25 = vpop.eup %947 }
 0x179   : > { %864 = vmatpush3.msra.mxu1 %v563_v22  ;;  %v560_v4 = vmul.f32 %v948_v25, %v517_v6 }
 0x17a   : > { %865 = vmatprep.subr.mxu1 %v562_v24 }
 0x17b   : > { %866 = vmatpush3.msra.mxu1 %v562_v24 }
 0x17c   : > { %867 = vmatprep.subr.mxu1 %v561_v26 }
 0x17d   : > { %868 = vmatpush3.msra.mxu1 %v561_v26 }
 0x17e   : > { %869 = vmatprep.subr.mxu1 %v560_v4 }
 0x17f   : > { %870 = vmatpush3.msra.mxu1 %v560_v4 }
 0x180   : > { %872 = vmatmul.mubr.msk.f32.vlgmr.msra.gmra.mxu1 %vm568_vm2, %v565_v27 }
 0x181   : > { %874 = vmatprep.mubr.msk.f32.mxu1 %vm568_vm2, %v566_v28 }
 0x184   : > { %875 = vmatmul.mubr.msk.f32.gmra.mxu1 %vm568_vm2, %v567_v29 }
 0x240   : > { %v873_v30 = vpop.f32.mrf.mxu1 }
 0x241   : > { %v830_v31 = vmul.f32 -1.442695, %v873_v30 }
 0x242   : > { %v647_v32 = vpop.f32.mrf.mxu1 }
 0x243   : > { %949 = vpow2.f32 %v830_v31  ;;  %v829_v33 = vmul.f32 -1.442695, %v647_v32 }
 0x244   : > { %v876_v34 = vpop.f32.mrf.mxu1 }
 0x245   : > { %951 = vpow2.f32 %v829_v33  ;;  %v832_v35 = vmul.f32 -1.442695, %v876_v34 }
 0x246   : > { %v657_v36 = vpop.f32.mrf.mxu1 }
 0x247   : > { %953 = vpow2.f32 %v832_v35  ;;  %v831_v37 = vmul.f32 -1.442695, %v657_v36 }
 0x249   : > { %955 = vpow2.f32 %v831_v37 }
 0x250   : > { %v950_v38 = vpop.eup %949 }
 0x251   : > { %v679_v39 = vadd.f32 1.0, %v950_v38 }
 0x252   : > { %v952_v40 = vpop.eup %951 }
 0x253   : > { %957 = vrcp.f32 %v679_v39  ;;  %v678_v41 = vadd.f32 1.0, %v952_v40 }
 0x254   : > { %v954_v1 = vpop.eup %953 }
 0x255   : > { %959 = vrcp.f32 %v678_v41  ;;  %v681_v42 = vadd.f32 1.0, %v954_v1 }
 0x256   : > { %v956_v43 = vpop.eup %955 }
 0x257   : > { %961 = vrcp.f32 %v681_v42  ;;  %v680_v44 = vadd.f32 1.0, %v956_v43 }
 0x259   : > { %963 = vrcp.f32 %v680_v44 }
 0x260   : > { %v958_v46 = vpop.eup %957 }
 0x261   : > { %v691_v49 = vmul.f32 %v958_v46, %v873_v30 }
 0x262   : > { %v960_v47 = vpop.eup %959 }
 0x263   : > { %v690_v50 = vmul.f32 %v960_v47, %v647_v32  ;;  %v719_v57 = vmul.f32 %v706_v52, %v691_v49 }
 0x264   : > { %v962_v51 = vpop.eup %961 }
 0x265   : > { %v718_v53 = vmul.f32 %v701_v45, %v690_v50  ;;  %v693_v55 = vmul.f32 %v962_v51, %v876_v34 }
 0x266   : > { %v964_v54 = vpop.eup %963 }
 0x267   : > { %v692_v56 = vmul.f32 %v964_v54, %v657_v36  ;;  %v722_v60 = vadd.f32 %v719_v57, %v718_v53  ;;  %v721_v61 = vmul.f32 %v716_v58, %v693_v55 }
 0x269   : > { %v720_v59 = vmul.f32 %v711_v48, %v692_v56 }
 0x26b   : > { %v723_v62 = vadd.f32 %v722_v60, %v720_v59 }
 0x26d   : > { %v724_v63 = vadd.f32 %v723_v62, %v721_v61 }
 0x26f   : > { %v725_v0 = vrot.slane %v724_v63, 4 }
 0x271   : > { %v726_v2 = vadd.f32 %v725_v0, %v724_v63 }
 0x273   : > { %v727_v3 = vrot.slane %v726_v2, 2 }
 0x275   : > { %v728_v5 = vadd.f32 %v727_v3, %v726_v2 }
 0x277   : > { %v729_v6 = vrot.slane %v728_v5, 1 }
 0x279   : > { %v730_v7 = vadd.f32 %v729_v6, %v728_v5 }
 0x27b   : > { %731 = vst [vmem:[%s187_s20] sm:$0x1] %v730_v7 }
 0x27c   : > { %978 = shalt.err (!%p975_p3)
}
 0x27d   : > { %s979_s7 = scalar_lea.hbm %s743_s28, 16  ;;  %s983_s10 = scalar_lea.hbm %s1217_s4, 32 }
 0x27e   : > { %p980_p4 = scmp.ne.s32.totalorder %s743_s28, %s979_s7  ;;  %p984_p9 = scmp.lt.s32.totalorder %s743_s28, %s1217_s4 }
 0x27f   : > { %p985_p10 = scmp.lt.s32.totalorder %s983_s10, %s979_s7 }
 0x280   : > { %p981_p7 = pnand %p980_p4, %p1098_p5 }
 0x281   : > { %p986_p11 = por %p985_p10, %p984_p9 }
 0x282   : > { %p982_p8 = pneg %p981_p7 }
 0x284   : > { %p987_p12 = pnand %p986_p11, %p982_p8 }
 0x286   : > { %990 = shalt.err (!%p987_p12)
}
 0x287   : > { %881 = dma.vmem_to_hbm [thread:$0]  (%p1098_p5), %s746_s22, 16, %s743_s28, %s733_s29  }
 0x288 PF: > { %p887_p13 = scmp.ge.s32.totalorder %s1025_s18, 2  ;;  %s757_s13 = sand.u32 1, %s1013_s15  }
 0x289   : > { %s758_s14 = scalar_lea.sflag [#allocation4], %s757_s13 }
 0x28a   : > { %p884_p0 = pnand %p887_p13, %p1102_p6 }
 0x28c   : > { %p885_p1 = pneg %p884_p0 }
 0x28e   : > { %1008 = dma.done.wait (%p885_p1), %s758_s14, 16  }
 0x28f   : > { %1010 = vsyncadd (%p885_p1), %s758_s14, 4294967280  ;;  %p14_p2 = scmp.ge.s32.totalorder %s1085_s21, 4   ;;  %s1220_s15 = smov %s1017_s16 }
 0x290   : > { %s1221_s16 = smov %s1021_s17  ;;  %s1222_s17 = smov %s1096_s24 }
 0x291   : > { %s1223_s18 = smov %s1085_s21  ;;  %16 = sbr.rel (!%p14_p2) target bundleno = 3 (0x3), region = 71 }
 0x296   :  { %762 = vsyncpa [#allocation4], 1 }
 0x297   :  { %764 = vsyncpa [#allocation4 + $0x1], 1 }

</bundles_post_ra>
